<compile_context>
chip_gen: v6e
topology: v6e:2x2x1
jax: 0.10.0
libtpu: 0.0.40
codegen_flags: <defaults>
</compile_context>

<pallas_src>
import functools

import jax
import jax.numpy as jnp
from jax.experimental import pallas as pl
from jax.experimental.pallas import tpu as pltpu

LATENT_DIM = 32            # MotionDiffusion.latent_dim
E_DIM = 32                 # MotionDiffusion.e_dim (body latent channel dim)
MOTION_DIM = 48            # surrogate motion feature dim for the (unspecified) TransformerCVAE
SPARSE_DIM = 54            # 3 x 18 sparse tracking signal
NUM_TRAIN_TIMESTEPS = 1000 # scheduler.config.num_train_timesteps
OUT_PAD = 128              # packed lane-dense output: [lat_gt 32 | lat_pred 32 | dec 48 | 0 x16]


def _round_up(n, m):
    return ((n + m - 1) // m) * m


def _choose_seq_tile(bs, seq, target_rows=8192):
    """Multiple-of-8 seq tile so each grid step streams ~target_rows (bs*seq_tile) rows."""
    t = max(1, target_rows // max(bs, 1))
    t = min(t, seq)
    return _round_up(t, 8)


# ---------------------------------------------------------------------------
# Single fused kernel:
#   grid over seq tiles ("arbitrary" / reduction axis):
#     - accumulate seq-sums of sparse (bs,54) and motion_gt (bs,48) in f32 VMEM scratch
#   last step:
#     - pooled cond  = mean(sparse) @ W_fold + b_fold        (folded Conv1d+Linear, linearity)
#     - lat_gt       = mean(motion) @ W_enc + b_enc          (body_vae.encode surrogate)
#     - noisy        = sqrt(acp)*lat_gt + sqrt(1-acp)*noise  (DDPM scheduler.add_noise)
#     - lat_pred     = noisy @ W_den_x + cond @ W_den_c + b  (denoiser surrogate)
#     - dec          = lat_pred @ W_dec + b_dec              (body_vae.decode surrogate)
#     - write packed (bs, 128) lane-dense output
# ---------------------------------------------------------------------------
def _fused_kernel(sparse_ref, motion_ref, noise_ref, a_ref, b_ref,
                  w_cond_ref, b_cond_ref, w_enc_ref, b_enc_ref,
                  w_den_x_ref, w_den_c_ref, b_den_ref, w_dec_ref, b_dec_ref,
                  out_ref, sum_sparse, sum_motion, *, inv_seq):
    s = pl.program_id(0)

    @pl.when(s == 0)
    def _():
        sum_sparse[...] = jnp.zeros_like(sum_sparse)
        sum_motion[...] = jnp.zeros_like(sum_motion)

    # Stream the bf16 seq tiles; accumulate per-batch seq-sums in f32.
    sum_sparse[...] += jnp.sum(sparse_ref[...].astype(jnp.float32), axis=1)
    sum_motion[...] += jnp.sum(motion_ref[...].astype(jnp.float32), axis=1)

    @pl.when(s == pl.num_programs(0) - 1)
    def _():
        pooled_sparse = (sum_sparse[...] * inv_seq).astype(jnp.bfloat16)   # (bs, 54)
        pooled_motion = (sum_motion[...] * inv_seq).astype(jnp.bfloat16)   # (bs, 48)

        # Folded cond_encoder (Conv1d 3->22, k=1) + cond_encoder2 (Linear 396->32) applied to
        # the seq-mean (mean commutes with the linear map).
        cond_mean = (jnp.dot(pooled_sparse, w_cond_ref[...],
                             preferred_element_type=jnp.float32) + b_cond_ref[...])

        # body_vae.encode surrogate
        lat_gt = (jnp.dot(pooled_motion, w_enc_ref[...],
                          preferred_element_type=jnp.float32) + b_enc_ref[...])

        # DDPM scheduler.add_noise: sqrt(acp)*x + sqrt(1-acp)*noise (per-batch scalars broadcast)
        noisy = a_ref[...] * lat_gt + b_ref[...] * noise_ref[...]

        # denoiser surrogate (K=32 cond dot, no zero-padded columns)
        lat_pred = (jnp.dot(noisy.astype(jnp.bfloat16), w_den_x_ref[...],
                            preferred_element_type=jnp.float32)
                    + jnp.dot(cond_mean.astype(jnp.bfloat16), w_den_c_ref[...],
                              preferred_element_type=jnp.float32)
                    + b_den_ref[...])

        # body_vae.decode surrogate
        dec = (jnp.dot(lat_pred.astype(jnp.bfloat16), w_dec_ref[...],
                       preferred_element_type=jnp.float32) + b_dec_ref[...])

        pad = jnp.zeros((out_ref.shape[0], OUT_PAD - 2 * E_DIM - MOTION_DIM), jnp.float32)
        out_ref[...] = jnp.concatenate([lat_gt, lat_pred, dec, pad], axis=-1)


def fused_forward(params, motion_gt, sparse, noise, sqrt_acp, sqrt_1m_acp):
    bs, seq, motion_dim = motion_gt.shape
    feat = sparse.shape[-1]

    seq_tile = _choose_seq_tile(bs, seq)
    seq_pad = _round_up(seq, seq_tile)

    sp = sparse.astype(jnp.bfloat16)
    mg = motion_gt.astype(jnp.bfloat16)
    if seq_pad != seq:
        # zero-pad seq: sums unaffected; divide by the true seq inside the kernel
        sp = jnp.pad(sp, ((0, 0), (0, seq_pad - seq), (0, 0)))
        mg = jnp.pad(mg, ((0, 0), (0, seq_pad - seq), (0, 0)))

    kernel = functools.partial(_fused_kernel, inv_seq=1.0 / float(seq))
    vmem = pltpu.MemorySpace.VMEM

    packed = pl.pallas_call(
        kernel,
        out_shape=jax.ShapeDtypeStruct((bs, OUT_PAD), jnp.float32),
        grid=(seq_pad // seq_tile,),
        in_specs=[
            pl.BlockSpec((bs, seq_tile, feat), lambda s: (0, s, 0)),        # sparse (bf16 tiles)
            pl.BlockSpec((bs, seq_tile, motion_dim), lambda s: (0, s, 0)),  # motion_gt (bf16 tiles)
            pl.BlockSpec(memory_space=vmem),   # noise (bs, 32)
            pl.BlockSpec(memory_space=vmem),   # sqrt(acp) (bs, 1)
            pl.BlockSpec(memory_space=vmem),   # sqrt(1-acp) (bs, 1)
            pl.BlockSpec(memory_space=vmem),   # w_cond (54, 32) bf16, resident
            pl.BlockSpec(memory_space=vmem),   # b_cond (1, 32)
            pl.BlockSpec(memory_space=vmem),   # w_enc (48, 32) bf16
            pl.BlockSpec(memory_space=vmem),   # b_enc (1, 32)
            pl.BlockSpec(memory_space=vmem),   # w_den_x (32, 32) bf16
            pl.BlockSpec(memory_space=vmem),   # w_den_c (32, 32) bf16
            pl.BlockSpec(memory_space=vmem),   # b_den (1, 32)
            pl.BlockSpec(memory_space=vmem),   # w_dec (32, 48) bf16
            pl.BlockSpec(memory_space=vmem),   # b_dec (1, 48)
        ],
        out_specs=pl.BlockSpec((bs, OUT_PAD), lambda s: (0, 0)),
        scratch_shapes=[pltpu.VMEM((bs, feat), jnp.float32),
                        pltpu.VMEM((bs, motion_dim), jnp.float32)],
        compiler_params=pltpu.CompilerParams(dimension_semantics=("arbitrary",)),
    )(sp, mg, noise, sqrt_acp, sqrt_1m_acp,
      params["w_cond"], params["b_cond"], params["w_enc"], params["b_enc"],
      params["w_den_x"], params["w_den_c"], params["b_den"],
      params["w_dec"], params["b_dec"])
    return packed


# ---------------------------------------------------------------------------
# Deterministic parameter init + host-side algebraic fold of the cond encoders
# ---------------------------------------------------------------------------
def init_params(key):
    ks = jax.random.split(key, 8)
    p = {}
    # MotionDiffusion.cond_encoder = nn.Conv1d(3, 22, 1): weight (22, 3, 1) -> (22, 3)
    wc = jax.random.normal(ks[0], (22, 3), jnp.float32) * 0.2
    bc = jax.random.normal(ks[1], (22,), jnp.float32) * 0.05
    # MotionDiffusion.cond_encoder2 = nn.Linear(396, latent_dim); stored transposed
    w2t = jax.random.normal(ks[2], (396, LATENT_DIM), jnp.float32) / jnp.sqrt(396.0)
    b2 = jnp.zeros((LATENT_DIM,), jnp.float32)

    # Fold Conv1d(k=1) into the Linear (exact algebra, once on host):
    #   cond[t,d] = sum_{c,l} x[t, c*18+l] * (sum_o wc[o,c]*W2[o*18+l,d])
    #               + sum_{o,l} bc[o]*W2[o*18+l,d] + b2[d]
    w2r = w2t.reshape(22, 18, LATENT_DIM)
    w_eff = jnp.einsum("oc,old->cld", wc, w2r).reshape(SPARSE_DIM, LATENT_DIM)
    b_eff = jnp.einsum("o,old->d", bc, w2r) + b2
    p["w_cond"] = w_eff.astype(jnp.bfloat16)
    p["b_cond"] = b_eff.reshape(1, LATENT_DIM).astype(jnp.float32)

    # surrogate body_vae / denoiser parameters (see TODOs in forward)
    p["w_enc"] = (jax.random.normal(ks[3], (MOTION_DIM, E_DIM), jnp.float32)
                  / jnp.sqrt(float(MOTION_DIM))).astype(jnp.bfloat16)
    p["b_enc"] = jnp.zeros((1, E_DIM), jnp.float32)
    w_den = (jax.random.normal(ks[4], (E_DIM + LATENT_DIM, E_DIM), jnp.float32)
             / jnp.sqrt(float(E_DIM + LATENT_DIM)))
    p["w_den_x"] = w_den[:E_DIM].astype(jnp.bfloat16)        # acts on noisy latent
    p["w_den_c"] = w_den[E_DIM:].astype(jnp.bfloat16)        # acts on (un-padded) pooled cond
    p["b_den"] = jnp.zeros((1, E_DIM), jnp.float32)
    p["w_dec"] = (jax.random.normal(ks[5], (E_DIM, MOTION_DIM), jnp.float32)
                  / jnp.sqrt(float(E_DIM))).astype(jnp.bfloat16)
    p["b_dec"] = jnp.zeros((1, MOTION_DIM), jnp.float32)

    # DDPM linear beta schedule -> alphas_cumprod (scheduler buffer)
    betas = jnp.linspace(1e-4, 0.02, NUM_TRAIN_TIMESTEPS, dtype=jnp.float32)
    p["alphas_cumprod"] = jnp.cumprod(1.0 - betas)
    return p


# ---------------------------------------------------------------------------
# TrainBodyLDMWrapper.forward  (diffusion_reverse=False training path)
# ---------------------------------------------------------------------------
def train_body_ldm_forward(params, motion_gt, sparse, rng):
    bs, seq = sparse.shape[:2]

    # TODO(synk): mask_training random joint masking (RNG masking of 22 joints in train mode) is omitted.
    # TODO(synk): TransformerCVAE body_vae and the DiT denoiser configs are not defined in the
    #             reference; deterministic mean-pool + Linear surrogates stand in for
    #             encode/denoise/decode.  A real sequence-consuming DiT would need the
    #             per-timestep cond path restored (tiled (bs*seq,54)x(54,D) GEMM kernel).
    k_noise, k_t = jax.random.split(rng)
    noise = jax.random.normal(k_noise, (bs, E_DIM), jnp.float32)
    timesteps = jax.random.randint(k_t, (bs,), 0, NUM_TRAIN_TIMESTEPS)
    acp = params["alphas_cumprod"][timesteps]                         # (bs,)
    sqrt_acp = jnp.sqrt(acp).reshape(bs, 1)
    sqrt_1m_acp = jnp.sqrt(1.0 - acp).reshape(bs, 1)

    packed = fused_forward(params, motion_gt, sparse, noise, sqrt_acp, sqrt_1m_acp)

    latent_gt = packed[:, :E_DIM].reshape(bs, 1, E_DIM)
    latent_pred = packed[:, E_DIM:2 * E_DIM].reshape(bs, 1, E_DIM)
    dec = packed[:, 2 * E_DIM:2 * E_DIM + MOTION_DIM]
    motion_pred = jnp.broadcast_to(dec[:, None, :], (bs, seq, MOTION_DIM))
    return latent_gt, latent_pred, motion_pred


if __name__ == "__main__":
    key = jax.random.PRNGKey(0)
    k_param, k_motion, k_sparse, k_fwd = jax.random.split(key, 4)
    params = init_params(k_param)

    bs, seq = 2, 8
    motion_gt = jax.random.normal(k_motion, (bs, seq, MOTION_DIM), jnp.float32)
    sparse = jax.random.normal(k_sparse, (bs, seq, SPARSE_DIM), jnp.float32)  # 3 x 18 tracking

    fwd = jax.jit(functools.partial(train_body_ldm_forward, params))
    latent_gt, latent_pred, motion_pred = fwd(motion_gt, sparse, k_fwd)
    jax.block_until_ready((latent_gt, latent_pred, motion_pred))

    assert latent_gt.shape == (bs, 1, E_DIM)
    assert latent_pred.shape == (bs, 1, E_DIM)
    assert motion_pred.shape == (bs, seq, MOTION_DIM)
    assert bool(jnp.all(jnp.isfinite(latent_pred))) and bool(jnp.all(jnp.isfinite(motion_pred)))
    print("KERNEL_OK")
</pallas_src>

<mosaic_0001>
module attributes {stable_mosaic.version = 11 : i64} {
  func.func @_fused_kernel(%arg0: i32, %arg1: memref<2x8x54xbf16, #tpu.memory_space<vmem>>, %arg2: memref<2x8x48xbf16, #tpu.memory_space<vmem>>, %arg3: memref<2x32xf32, #tpu.memory_space<vmem>>, %arg4: memref<2x1xf32, #tpu.memory_space<vmem>>, %arg5: memref<2x1xf32, #tpu.memory_space<vmem>>, %arg6: memref<54x32xbf16, #tpu.memory_space<vmem>>, %arg7: memref<1x32xf32, #tpu.memory_space<vmem>>, %arg8: memref<48x32xbf16, #tpu.memory_space<vmem>>, %arg9: memref<1x32xf32, #tpu.memory_space<vmem>>, %arg10: memref<32x32xbf16, #tpu.memory_space<vmem>>, %arg11: memref<32x32xbf16, #tpu.memory_space<vmem>>, %arg12: memref<1x32xf32, #tpu.memory_space<vmem>>, %arg13: memref<32x48xbf16, #tpu.memory_space<vmem>>, %arg14: memref<1x48xf32, #tpu.memory_space<vmem>>, %arg15: memref<2x128xf32, #tpu.memory_space<vmem>>, %arg16: memref<2x54xf32, #tpu.memory_space<vmem>>, %arg17: memref<2x48xf32, #tpu.memory_space<vmem>>) attributes {dimension_semantics = [#tpu.dimension_semantics<arbitrary>], iteration_bounds = array<i64: 1>, scalar_prefetch = 0 : i64, scratch_operands = 2 : i64, tpu.core_type = #tpu.core_type<tc>, window_params = [{transform_indices = @transform_0, window_bounds = array<i64: 2, 8, 54>}, {transform_indices = @transform_1, window_bounds = array<i64: 2, 8, 48>}, {pipeline_mode = #tpu.pipeline_mode<synchronous>, transform_indices = @transform_2, window_bounds = array<i64: 2, 32>}, {pipeline_mode = #tpu.pipeline_mode<synchronous>, transform_indices = @transform_3, window_bounds = array<i64: 2, 1>}, {pipeline_mode = #tpu.pipeline_mode<synchronous>, transform_indices = @transform_4, window_bounds = array<i64: 2, 1>}, {pipeline_mode = #tpu.pipeline_mode<synchronous>, transform_indices = @transform_5, window_bounds = array<i64: 54, 32>}, {pipeline_mode = #tpu.pipeline_mode<synchronous>, transform_indices = @transform_6, window_bounds = array<i64: 1, 32>}, {pipeline_mode = #tpu.pipeline_mode<synchronous>, transform_indices = @transform_7, window_bounds = array<i64: 48, 32>}, {pipeline_mode = #tpu.pipeline_mode<synchronous>, transform_indices = @transform_8, window_bounds = array<i64: 1, 32>}, {pipeline_mode = #tpu.pipeline_mode<synchronous>, transform_indices = @transform_9, window_bounds = array<i64: 32, 32>}, {pipeline_mode = #tpu.pipeline_mode<synchronous>, transform_indices = @transform_10, window_bounds = array<i64: 32, 32>}, {pipeline_mode = #tpu.pipeline_mode<synchronous>, transform_indices = @transform_11, window_bounds = array<i64: 1, 32>}, {pipeline_mode = #tpu.pipeline_mode<synchronous>, transform_indices = @transform_12, window_bounds = array<i64: 32, 48>}, {pipeline_mode = #tpu.pipeline_mode<synchronous>, transform_indices = @transform_13, window_bounds = array<i64: 1, 48>}, {pipeline_mode = #tpu.pipeline_mode<synchronous>, transform_indices = @transform_14, window_bounds = array<i64: 2, 128>}]} {
    %c0_i32 = arith.constant 0 : i32
    %0 = arith.cmpi eq, %arg0, %c0_i32 : i32
    %1 = arith.extui %0 : i1 to i32
    %c0_i32_0 = arith.constant 0 : i32
    %2 = arith.cmpi ne, %1, %c0_i32_0 : i32
    scf.if %2 {
      %cst_17 = arith.constant 0.000000e+00 : f32
      %18 = vector.broadcast %cst_17 : f32 to vector<2x54xf32>
      %c0_18 = arith.constant 0 : index
      %c0_19 = arith.constant 0 : index
      %19 = vector.load %arg16[%c0_18, %c0_19] : memref<2x54xf32, #tpu.memory_space<vmem>>, vector<2x54xf32>
      tpu.vector_store %arg16[%c0_18, %c0_19], %18 {strides = array<i32>} : memref<2x54xf32, #tpu.memory_space<vmem>>, vector<2x54xf32>,
      %cst_20 = arith.constant 0.000000e+00 : f32
      %20 = vector.broadcast %cst_20 : f32 to vector<2x48xf32>
      %c0_21 = arith.constant 0 : index
      %c0_22 = arith.constant 0 : index
      %21 = vector.load %arg17[%c0_21, %c0_22] : memref<2x48xf32, #tpu.memory_space<vmem>>, vector<2x48xf32>
      tpu.vector_store %arg17[%c0_21, %c0_22], %20 {strides = array<i32>} : memref<2x48xf32, #tpu.memory_space<vmem>>, vector<2x48xf32>,
    } else {
    }
    %c0 = arith.constant 0 : index
    %c0_1 = arith.constant 0 : index
    %3 = vector.load %arg16[%c0, %c0_1] : memref<2x54xf32, #tpu.memory_space<vmem>>, vector<2x54xf32>
    %c0_2 = arith.constant 0 : index
    %c0_3 = arith.constant 0 : index
    %c0_4 = arith.constant 0 : index
    %4 = vector.load %arg1[%c0_2, %c0_3, %c0_4] : memref<2x8x54xbf16, #tpu.memory_space<vmem>>, vector<2x8x54xbf16>
    %5 = arith.extf %4 : vector<2x8x54xbf16> to vector<2x8x54xf32>
    %cst = arith.constant dense<0.000000e+00> : vector<2x54xf32>
    %6 = vector.multi_reduction <add>, %5, %cst [1] : vector<2x8x54xf32> to vector<2x54xf32>
    %7 = arith.addf %3, %6 : vector<2x54xf32>
    %c0_5 = arith.constant 0 : index
    %c0_6 = arith.constant 0 : index
    %8 = vector.load %arg16[%c0_5, %c0_6] : memref<2x54xf32, #tpu.memory_space<vmem>>, vector<2x54xf32>
    tpu.vector_store %arg16[%c0_5, %c0_6], %7 {strides = array<i32>} : memref<2x54xf32, #tpu.memory_space<vmem>>, vector<2x54xf32>,
    %c0_7 = arith.constant 0 : index
    %c0_8 = arith.constant 0 : index
    %9 = vector.load %arg17[%c0_7, %c0_8] : memref<2x48xf32, #tpu.memory_space<vmem>>, vector<2x48xf32>
    %c0_9 = arith.constant 0 : index
    %c0_10 = arith.constant 0 : index
    %c0_11 = arith.constant 0 : index
    %10 = vector.load %arg2[%c0_9, %c0_10, %c0_11] : memref<2x8x48xbf16, #tpu.memory_space<vmem>>, vector<2x8x48xbf16>
    %11 = arith.extf %10 : vector<2x8x48xbf16> to vector<2x8x48xf32>
    %cst_12 = arith.constant dense<0.000000e+00> : vector<2x48xf32>
    %12 = vector.multi_reduction <add>, %11, %cst_12 [1] : vector<2x8x48xf32> to vector<2x48xf32>
    %13 = arith.addf %9, %12 : vector<2x48xf32>
    %c0_13 = arith.constant 0 : index
    %c0_14 = arith.constant 0 : index
    %14 = vector.load %arg17[%c0_13, %c0_14] : memref<2x48xf32, #tpu.memory_space<vmem>>, vector<2x48xf32>
    tpu.vector_store %arg17[%c0_13, %c0_14], %13 {strides = array<i32>} : memref<2x48xf32, #tpu.memory_space<vmem>>, vector<2x48xf32>,
    %c0_i32_15 = arith.constant 0 : i32
    %15 = arith.cmpi eq, %arg0, %c0_i32_15 : i32
    %16 = arith.extui %15 : i1 to i32
    %c0_i32_16 = arith.constant 0 : i32
    %17 = arith.cmpi ne, %16, %c0_i32_16 : i32
    scf.if %17 {
      %c0_17 = arith.constant 0 : index
      %c0_18 = arith.constant 0 : index
      %18 = vector.load %arg16[%c0_17, %c0_18] : memref<2x54xf32, #tpu.memory_space<vmem>>, vector<2x54xf32>
      %cst_19 = arith.constant 1.250000e-01 : f32
      %19 = vector.broadcast %cst_19 : f32 to vector<2x54xf32>
      %20 = arith.mulf %18, %19 : vector<2x54xf32>
      %21 = arith.truncf %20 : vector<2x54xf32> to vector<2x54xbf16>
      %c0_20 = arith.constant 0 : index
      %c0_21 = arith.constant 0 : index
      %22 = vector.load %arg17[%c0_20, %c0_21] : memref<2x48xf32, #tpu.memory_space<vmem>>, vector<2x48xf32>
      %cst_22 = arith.constant 1.250000e-01 : f32
      %23 = vector.broadcast %cst_22 : f32 to vector<2x48xf32>
      %24 = arith.mulf %22, %23 : vector<2x48xf32>
      %25 = arith.truncf %24 : vector<2x48xf32> to vector<2x48xbf16>
      %c0_23 = arith.constant 0 : index
      %c0_24 = arith.constant 0 : index
      %26 = vector.load %arg6[%c0_23, %c0_24] : memref<54x32xbf16, #tpu.memory_space<vmem>>, vector<54x32xbf16>
      %cst_25 = arith.constant dense<0.000000e+00> : vector<2x32xf32>
      %27 = tpu.matmul %21, %26, %cst_25 {dimension_numbers = #tpu.dot_dimension_numbers<[1], [0], [0], [1], [0, 0, 1, 1], [], []>} : vector<2x54xbf16>, vector<54x32xbf16>, vector<2x32xf32> -> vector<2x32xf32>
      %c0_26 = arith.constant 0 : index
      %c0_27 = arith.constant 0 : index
      %28 = vector.load %arg7[%c0_26, %c0_27] : memref<1x32xf32, #tpu.memory_space<vmem>>, vector<1x32xf32>
      %29 = vector.broadcast %28 : vector<1x32xf32> to vector<2x32xf32>
      %30 = arith.addf %27, %29 : vector<2x32xf32>
      %c0_28 = arith.constant 0 : index
      %c0_29 = arith.constant 0 : index
      %31 = vector.load %arg8[%c0_28, %c0_29] : memref<48x32xbf16, #tpu.memory_space<vmem>>, vector<48x32xbf16>
      %cst_30 = arith.constant dense<0.000000e+00> : vector<2x32xf32>
      %32 = tpu.matmul %25, %31, %cst_30 {dimension_numbers = #tpu.dot_dimension_numbers<[1], [0], [0], [1], [0, 0, 1, 1], [], []>} : vector<2x48xbf16>, vector<48x32xbf16>, vector<2x32xf32> -> vector<2x32xf32>
      %c0_31 = arith.constant 0 : index
      %c0_32 = arith.constant 0 : index
      %33 = vector.load %arg9[%c0_31, %c0_32] : memref<1x32xf32, #tpu.memory_space<vmem>>, vector<1x32xf32>
      %34 = vector.broadcast %33 : vector<1x32xf32> to vector<2x32xf32>
      %35 = arith.addf %32, %34 : vector<2x32xf32>
      %c0_33 = arith.constant 0 : index
      %c0_34 = arith.constant 0 : index
      %36 = vector.load %arg4[%c0_33, %c0_34] : memref<2x1xf32, #tpu.memory_space<vmem>>, vector<2x1xf32>
      %37 = vector.broadcast %36 : vector<2x1xf32> to vector<2x32xf32>
      %38 = arith.mulf %37, %35 : vector<2x32xf32>
      %c0_35 = arith.constant 0 : index
      %c0_36 = arith.constant 0 : index
      %39 = vector.load %arg5[%c0_35, %c0_36] : memref<2x1xf32, #tpu.memory_space<vmem>>, vector<2x1xf32>
      %c0_37 = arith.constant 0 : index
      %c0_38 = arith.constant 0 : index
      %40 = vector.load %arg3[%c0_37, %c0_38] : memref<2x32xf32, #tpu.memory_space<vmem>>, vector<2x32xf32>
      %41 = vector.broadcast %39 : vector<2x1xf32> to vector<2x32xf32>
      %42 = arith.mulf %41, %40 : vector<2x32xf32>
      %43 = arith.addf %38, %42 : vector<2x32xf32>
      %44 = arith.truncf %43 : vector<2x32xf32> to vector<2x32xbf16>
      %c0_39 = arith.constant 0 : index
      %c0_40 = arith.constant 0 : index
      %45 = vector.load %arg10[%c0_39, %c0_40] : memref<32x32xbf16, #tpu.memory_space<vmem>>, vector<32x32xbf16>
      %cst_41 = arith.constant dense<0.000000e+00> : vector<2x32xf32>
      %46 = tpu.matmul %44, %45, %cst_41 {dimension_numbers = #tpu.dot_dimension_numbers<[1], [0], [0], [1], [0, 0, 1, 1], [], []>} : vector<2x32xbf16>, vector<32x32xbf16>, vector<2x32xf32> -> vector<2x32xf32>
      %47 = arith.truncf %30 : vector<2x32xf32> to vector<2x32xbf16>
      %c0_42 = arith.constant 0 : index
      %c0_43 = arith.constant 0 : index
      %48 = vector.load %arg11[%c0_42, %c0_43] : memref<32x32xbf16, #tpu.memory_space<vmem>>, vector<32x32xbf16>
      %cst_44 = arith.constant dense<0.000000e+00> : vector<2x32xf32>
      %49 = tpu.matmul %47, %48, %cst_44 {dimension_numbers = #tpu.dot_dimension_numbers<[1], [0], [0], [1], [0, 0, 1, 1], [], []>} : vector<2x32xbf16>, vector<32x32xbf16>, vector<2x32xf32> -> vector<2x32xf32>
      %50 = arith.addf %46, %49 : vector<2x32xf32>
      %c0_45 = arith.constant 0 : index
      %c0_46 = arith.constant 0 : index
      %51 = vector.load %arg12[%c0_45, %c0_46] : memref<1x32xf32, #tpu.memory_space<vmem>>, vector<1x32xf32>
      %52 = vector.broadcast %51 : vector<1x32xf32> to vector<2x32xf32>
      %53 = arith.addf %50, %52 : vector<2x32xf32>
      %54 = arith.truncf %53 : vector<2x32xf32> to vector<2x32xbf16>
      %c0_47 = arith.constant 0 : index
      %c0_48 = arith.constant 0 : index
      %55 = vector.load %arg13[%c0_47, %c0_48] : memref<32x48xbf16, #tpu.memory_space<vmem>>, vector<32x48xbf16>
      %cst_49 = arith.constant dense<0.000000e+00> : vector<2x48xf32>
      %56 = tpu.matmul %54, %55, %cst_49 {dimension_numbers = #tpu.dot_dimension_numbers<[1], [0], [0], [1], [0, 0, 1, 1], [], []>} : vector<2x32xbf16>, vector<32x48xbf16>, vector<2x48xf32> -> vector<2x48xf32>
      %c0_50 = arith.constant 0 : index
      %c0_51 = arith.constant 0 : index
      %57 = vector.load %arg14[%c0_50, %c0_51] : memref<1x48xf32, #tpu.memory_space<vmem>>, vector<1x48xf32>
      %58 = vector.broadcast %57 : vector<1x48xf32> to vector<2x48xf32>
      %59 = arith.addf %56, %58 : vector<2x48xf32>
      %cst_52 = arith.constant 0.000000e+00 : f32
      %60 = vector.broadcast %cst_52 : f32 to vector<2x16xf32>
      %61 = tpu.concatenate %35, %53, %59, %60 in 1 : vector<2x32xf32>, vector<2x32xf32>, vector<2x48xf32>, vector<2x16xf32> -> vector<2x128xf32>
      %c0_53 = arith.constant 0 : index
      %c0_54 = arith.constant 0 : index
      %62 = vector.load %arg15[%c0_53, %c0_54] : memref<2x128xf32, #tpu.memory_space<vmem>>, vector<2x128xf32>
      tpu.vector_store %arg15[%c0_53, %c0_54], %61 {strides = array<i32>} : memref<2x128xf32, #tpu.memory_space<vmem>>, vector<2x128xf32>,
    } else {
    }
    return
  }
  func.func @transform_0(%arg0: i32) -> (i32, i32, i32) {
    %c0_i32 = arith.constant 0 : i32
    %c0_i32_0 = arith.constant 0 : i32
    %c0_i32_1 = arith.constant 0 : i32
    return %c0_i32, %arg0, %c0_i32_0 : i32, i32, i32
  }
  func.func @transform_1(%arg0: i32) -> (i32, i32, i32) {
    %c0_i32 = arith.constant 0 : i32
    %c0_i32_0 = arith.constant 0 : i32
    %c0_i32_1 = arith.constant 0 : i32
    return %c0_i32, %arg0, %c0_i32_0 : i32, i32, i32
  }
  func.func @transform_2(%arg0: i32) -> (i32, i32) {
    %c0_i32 = arith.constant 0 : i32
    %c0_i32_0 = arith.constant 0 : i32
    %c0_i32_1 = arith.constant 0 : i32
    return %c0_i32, %c0_i32_0 : i32, i32
  }
  func.func @transform_3(%arg0: i32) -> (i32, i32) {
    %c0_i32 = arith.constant 0 : i32
    %c0_i32_0 = arith.constant 0 : i32
    %c0_i32_1 = arith.constant 0 : i32
    return %c0_i32, %c0_i32_0 : i32, i32
  }
  func.func @transform_4(%arg0: i32) -> (i32, i32) {
    %c0_i32 = arith.constant 0 : i32
    %c0_i32_0 = arith.constant 0 : i32
    %c0_i32_1 = arith.constant 0 : i32
    return %c0_i32, %c0_i32_0 : i32, i32
  }
  func.func @transform_5(%arg0: i32) -> (i32, i32) {
    %c0_i32 = arith.constant 0 : i32
    %c0_i32_0 = arith.constant 0 : i32
    %c0_i32_1 = arith.constant 0 : i32
    return %c0_i32, %c0_i32_0 : i32, i32
  }
  func.func @transform_6(%arg0: i32) -> (i32, i32) {
    %c0_i32 = arith.constant 0 : i32
    %c0_i32_0 = arith.constant 0 : i32
    %c0_i32_1 = arith.constant 0 : i32
    return %c0_i32, %c0_i32_0 : i32, i32
  }
  func.func @transform_7(%arg0: i32) -> (i32, i32) {
    %c0_i32 = arith.constant 0 : i32
    %c0_i32_0 = arith.constant 0 : i32
    %c0_i32_1 = arith.constant 0 : i32
    return %c0_i32, %c0_i32_0 : i32, i32
  }
  func.func @transform_8(%arg0: i32) -> (i32, i32) {
    %c0_i32 = arith.constant 0 : i32
    %c0_i32_0 = arith.constant 0 : i32
    %c0_i32_1 = arith.constant 0 : i32
    return %c0_i32, %c0_i32_0 : i32, i32
  }
  func.func @transform_9(%arg0: i32) -> (i32, i32) {
    %c0_i32 = arith.constant 0 : i32
    %c0_i32_0 = arith.constant 0 : i32
    %c0_i32_1 = arith.constant 0 : i32
    return %c0_i32, %c0_i32_0 : i32, i32
  }
  func.func @transform_10(%arg0: i32) -> (i32, i32) {
    %c0_i32 = arith.constant 0 : i32
    %c0_i32_0 = arith.constant 0 : i32
    %c0_i32_1 = arith.constant 0 : i32
    return %c0_i32, %c0_i32_0 : i32, i32
  }
  func.func @transform_11(%arg0: i32) -> (i32, i32) {
    %c0_i32 = arith.constant 0 : i32
    %c0_i32_0 = arith.constant 0 : i32
    %c0_i32_1 = arith.constant 0 : i32
    return %c0_i32, %c0_i32_0 : i32, i32
  }
  func.func @transform_12(%arg0: i32) -> (i32, i32) {
    %c0_i32 = arith.constant 0 : i32
    %c0_i32_0 = arith.constant 0 : i32
    %c0_i32_1 = arith.constant 0 : i32
    return %c0_i32, %c0_i32_0 : i32, i32
  }
  func.func @transform_13(%arg0: i32) -> (i32, i32) {
    %c0_i32 = arith.constant 0 : i32
    %c0_i32_0 = arith.constant 0 : i32
    %c0_i32_1 = arith.constant 0 : i32
    return %c0_i32, %c0_i32_0 : i32, i32
  }
  func.func @transform_14(%arg0: i32) -> (i32, i32) {
    %c0_i32 = arith.constant 0 : i32
    %c0_i32_0 = arith.constant 0 : i32
    %c0_i32_1 = arith.constant 0 : i32
    return %c0_i32, %c0_i32_0 : i32, i32
  }
}

</mosaic_0001>

<bundles_post_ra>
// kernel: train_body_ldm_forward.21
= control target key start
LH: loop header
LB: loop body
LE: loop exit
PB: predicated region body
PF: predicated region fallthrough
CT: control target
= control target key end

     0   :  { %vm158_vm0 = vcmask 1042432   ;;  %vm52_vm1 = vcmask 435200   ;;  %v619_v0 = vmov 0.0   ;;  %vm620_vm2 = vmmov 0   ;;  %s623_s29 = smov 64   ;;  %s807_s5 = inlined_call_operand.vmem [shape: bf16[54,32], index: 5, kind: input, shape index: {}]   ;;  %s808_s7 = inlined_call_operand.vmem [shape: bf16[48,32], index: 7, kind: input, shape index: {}]   ;;  %s809_s0 = inlined_call_operand.vmem [shape: bf16[2,8,54], index: 0, kind: input, shape index: {}]   ;;  %s810_s1 = inlined_call_operand.vmem [shape: bf16[2,8,48], index: 1, kind: input, shape index: {}]   ;;  %s811_s3 = inlined_call_operand.vmem [shape: f32[2,1], index: 3, kind: input, shape index: {}]   ;;  %s812_s4 = inlined_call_operand.vmem [shape: f32[2,1], index: 4, kind: input, shape index: {}]   ;;  %s813_s10 = inlined_call_operand.vmem [shape: bf16[32,32], index: 10, kind: input, shape index: {}]   ;;  %s814_s9 = inlined_call_operand.vmem [shape: bf16[32,32], index: 9, kind: input, shape index: {}]   ;;  %s815_s6 = inlined_call_operand.vmem [shape: f32[1,32], index: 6, kind: input, shape index: {}]   ;;  %s816_s8 = inlined_call_operand.vmem [shape: f32[1,32], index: 8, kind: input, shape index: {}, may-alias: {8,11}]   ;;  %s817_s2 = inlined_call_operand.vmem [shape: f32[2,32], index: 2, kind: input, shape index: {}]   ;;  %s818_s12 = inlined_call_operand.vmem [shape: bf16[32,48], index: 12, kind: input, shape index: {}]   ;;  %s819_s11 = inlined_call_operand.vmem [shape: f32[1,32], index: 11, kind: input, shape index: {}, may-alias: {8,11}]   ;;  %s820_s13 = inlined_call_operand.vmem [shape: f32[1,48], index: 13, kind: input, shape index: {}]   ;;  %s821_s14 = inlined_call_operand.vmem [shape: f32[2,128], index: 14, kind: output, shape index: {}]  }
   0x1   :  { %554 = vmatprep.subr.bf16.mxu0 %v619_v0  ;;  %v606_v1 = vld [vmem:[%s807_s5 + $0x18] ss:$0 sps:$4 sm:$0x77]   ;;  %566 = vmatprep.subr.bf16.mxu1 %v619_v0  ;;  %53 = vst.msk [vmem:[#allocation2] sm:$0x3] %vm52_vm1, %v619_v0  ;;  %v608_v3 = vld [vmem:[%s808_s7 + $0x10] sm:$0xff]  }
   0x2   :  { %562 = vmatprep.mubr.msk.bf16.mxu0 %vm620_vm2, %v619_v0  ;;  %572 = vmatprep.mubr.msk.bf16.mxu1 %vm620_vm2, %v619_v0  ;;  %v160_v2 = vsel %vm158_vm0, %v606_v1, 0  ;;  %v607_v4 = vld [vmem:[%s807_s5 + $0x10] sm:$0xff]   ;;  %v610_v5 = vld [vmem:[%s808_s7 + $0x8] sm:$0xff]   ;;  %vm54_vm3 = vcmask 386048   ;;  %v529_v6 = vld [vmem:[%s809_s0] sm:$0xff]   ;;  %vm61_vm4 = vcmask 441344  }
   0x3   :  { %555 = vmatpush3.bf16.msra.mxu0 %v160_v2  ;;  %567 = vmatpush3.bf16.msra.mxu1 %v608_v3  ;;  %55 = vst.msk [vmem:[#allocation3] sm:$0x3] %vm54_vm3, %v619_v0  ;;  %v609_v7 = vld [vmem:[%s807_s5 + $0x8] sm:$0xff]   ;;  %v530_v8 = vunpack.c.l.bf16 %v529_v6  ;;  %v531_v9 = vunpack.c.h.bf16 %v529_v6  ;;  %v533_v10 = vld [vmem:[%s810_s1] sm:$0xff]   ;;  %vm89_vm5 = vcmask 392192   ;;  %v621_v11 = vmov 0  }
   0x4   :  { %556 = vmatprep.subr.bf16.mxu0 %v619_v0  ;;  %568 = vmatprep.subr.bf16.mxu1 %v619_v0  ;;  %v276_v12 = vld [vmem:[%s811_s3] sm:$0x3]  ;;  %v534_v14 = vunpack.c.l.bf16 %v533_v10  ;;  %v535_v15 = vunpack.c.h.bf16 %v533_v10  ;;  %vm78_vm6 = vcmask 1041409   ;;  %v613_v57 = vld [vmem:[%s813_s10 + $0x8] sm:$0xff]   ;;  %vm314_vm7 = vcmask 261120   ;;  %s622_s0 = smov 32  }
   0x5   :  { %605 = vset.pattern.permute.xlu0 %v621_v11  ;;  %v612_v13 = vld [vmem:[%s808_s7] sm:$0xff]   ;;  %v62_v16 = vsel %vm61_vm4, %v530_v8, 0.0  ;;  %v69_v17 = vsel %vm61_vm4, %v531_v9, 0.0  ;;  %v614_v59 = vld [vmem:[%s814_s9 + $0x8] sm:$0xff]   ;;  %vm497_vm8 = vcmask 523264   ;;  %vm499_vm9 = vcmask 916480  }
   0x6   :  { %279 = vperm.xlu0 %605, %v276_v12   ;;  %v283_v18 = vld [vmem:[%s812_s4] sm:$0x3]  ;;  %v63_v19 = vrot.slane %v62_v16, 4  ;;  %v70_v20 = vrot.slane %v69_v17, 4  ;;  %v90_v21 = vsel %vm89_vm5, %v534_v14, 0.0  ;;  %v97_v22 = vsel %vm89_vm5, %v535_v15, 0.0 }
   0x7   :  { %557 = vmatpush3.bf16.msra.mxu0 %v607_v4  ;;  %569 = vmatpush3.bf16.msra.mxu1 %v610_v5  ;;  %v611_v23 = vld [vmem:[%s807_s5] sm:$0xff]   ;;  %v91_v24 = vrot.slane %v90_v21, 4  ;;  %v98_v25 = vrot.slane %v97_v22, 4 }
   0x8   :  { %558 = vmatprep.subr.bf16.mxu0 %v619_v0  ;;  %570 = vmatprep.subr.bf16.mxu1 %v619_v0  ;;  %v64_v26 = vadd.f32 %v63_v19, %v62_v16  ;;  %v71_v27 = vadd.f32 %v70_v20, %v69_v17  ;;  %v56_v42 = vld [vmem:[#allocation2] sm:$0x3]  ;;  %v617_v19 = vld [vmem:[%s818_s12 + $0x8] sm:$0xff]  }
   0x9   :  { %v92_v28 = vadd.f32 %v91_v24, %v90_v21  ;;  %v99_v29 = vadd.f32 %v98_v25, %v97_v22  ;;  %v615_v60 = vld [vmem:[%s813_s10] sm:$0xff]  }
   0xa   :  { %287 = vperm.xlu0 %605, %v283_v18   ;;  %v65_v30 = vrot.slane %v64_v26, 2  ;;  %v72_v31 = vrot.slane %v71_v27, 2  ;;  %v84_v45 = vld [vmem:[#allocation3] sm:$0x3]  ;;  %v506_v63 = vld [vmem:[%s815_s6] ss:$0 sm:$0xff] }
   0xb   :  { %559 = vmatpush3.bf16.msra.mxu0 %v609_v7  ;;  %571 = vmatpush3.bf16.msra.mxu1 %v612_v13  ;;  %v93_v32 = vrot.slane %v92_v28, 2  ;;  %v100_v33 = vrot.slane %v99_v29, 2  ;;  %v616_v61 = vld [vmem:[%s814_s9] sm:$0xff]  }
   0xc   :  { %560 = vmatprep.subr.bf16.mxu0 %v619_v0  ;;  %576 = vmatprep.subr.bf16.mxu1 %v619_v0  ;;  %v66_v34 = vadd.f32 %v65_v30, %v64_v26  ;;  %v73_v35 = vadd.f32 %v72_v31, %v71_v27  ;;  %v512_v1 = vld [vmem:[%s816_s8] ss:$0 sm:$0xff] }
   0xd   :  { %v94_v36 = vadd.f32 %v93_v32, %v92_v28  ;;  %v101_v37 = vadd.f32 %v100_v33, %v99_v29  ;;  %v284_v4 = vld [vmem:[%s817_s2] sm:$0x3] }
   0xe   :  { %v67_v38 = vrot.slane %v66_v34, 1  ;;  %v74_v39 = vrot.slane %v73_v35, 1  ;;  %v618_v20 = vld [vmem:[%s818_s12] sm:$0xff]  }
   0xf   :  { %561 = vmatpush3.bf16.msra.mxu0 %v611_v23  ;;  %v95_v40 = vrot.slane %v94_v36, 1  ;;  %v102_v41 = vrot.slane %v101_v37, 1  ;;  %v523_v25 = vld [vmem:[%s819_s11] ss:$0 sm:$0xff] }
  0x10   :  { %584 = vmatprep.subr.bf16.mxu0 %v619_v0  ;;  %v68_v43 = vadd.f32 %v67_v38, %v66_v34  ;;  %v75_v44 = vadd.f32 %v74_v39, %v73_v35  ;;  %v524_v32 = vld [vmem:[%s820_s13] ss:$0 sm:$0xff] }
  0x11   :  { %v96_v46 = vadd.f32 %v95_v40, %v94_v36  ;;  %v103_v47 = vadd.f32 %v102_v41, %v101_v37 }
  0x12   :  { %v79_v48 = vsel %vm78_vm6, %v75_v44, %v68_v43 }
  0x13   :  { %v81_v49 = vadd.f32 %v79_v48, %v56_v42  ;;  %v106_v50 = vsel %vm78_vm6, %v103_v47, %v96_v46 }
  0x14   :  { %v108_v51 = vadd.f32 %v106_v50, %v84_v45 }
  0x15   :  { %83 = vst.msk [vmem:[#allocation2] sm:$0x3] %vm52_vm1, %v81_v49 }
  0x16   :  { %110 = vst.msk [vmem:[#allocation3] sm:$0x3] %vm54_vm3, %v108_v51 }
  0x1c   :  { %v114_v52 = vld [vmem:[#allocation2] sm:$0x3] }
  0x1d   :  { %v115_v53 = vmul.f32 0.125, %v114_v52  ;;  %v117_v54 = vld [vmem:[#allocation3] sm:$0x3] }
  0x1e   :  { %v118_v55 = vmul.f32 0.125, %v117_v54 }
  0x1f   :  { %v116_v56 = vpack.c.bf16 %v115_v53, %v115_v53 }
  0x20   :  { %v119_v58 = vpack.c.bf16 %v118_v55, %v118_v55 }
  0x21   :  { %563 = vmatmul.mubr.msk.bf16.vlgmr.msra.gmra.mxu0 %vm61_vm4, %v116_v56 }
  0x22   :  { %573 = vmatmul.mubr.msk.bf16.vlgmr.msra.gmra.mxu1 %vm89_vm5, %v119_v58  ;;  %588 = vmatprep.mubr.msk.bf16.mxu0 %vm620_vm2, %v619_v0 }
  0x23   :  { %577 = vmatpush3.bf16.msra.mxu1 %v613_v57  ;;  %580 = vmatprep.mubr.msk.bf16.mxu1 %vm620_vm2, %v619_v0 }
  0x24   :  { %578 = vmatprep.subr.bf16.mxu1 %v619_v0  ;;  %585 = vmatpush3.bf16.msra.mxu0 %v614_v59 }
  0x25   :  { %586 = vmatprep.subr.bf16.mxu0 %v619_v0 }
  0x27   :  { %579 = vmatpush3.bf16.msra.mxu1 %v615_v60 }
  0x28   :  { %592 = vmatprep.subr.bf16.mxu1 %v619_v0  ;;  %587 = vmatpush3.bf16.msra.mxu0 %v616_v61 }
  0x81   :  { %v280_v62 = vpop.permute.xlu0 %279 }
  0x85   :  { %v288_v3 = vpop.permute.xlu0 %287 }
  0x86   :  { %v290_v11 = vmul.f32 %v288_v3, %v284_v4 }
  0xe1   :  { %v196_v2 = vpop.f32.mrf.mxu0 }
  0xe2   :  { %v197_v5 = vadd.f32 %v506_v63, %v196_v2  ;;  %v270_v6 = vpop.f32.mrf.mxu1 }
  0xe3   :  { %v271_v7 = vadd.f32 %v512_v1, %v270_v6  ;;  %v564_v8 = vpop.f32.mrf.mxu0 }
  0xe4   :  { %v297_v9 = vpack.c.bf16 %v197_v5, %v197_v5  ;;  %v574_v10 = vpop.f32.mrf.mxu1 }
  0xe5   :  { %v282_v12 = vmul.f32 %v280_v62, %v271_v7  ;;  %v199_v13 = vpop.f32.mrf.mxu0 }
  0xe6   :  { %v273_v14 = vpop.f32.mrf.mxu1  ;;  %581 = vmatmul.mubr.msk.bf16.vlgmr.msra.gmra.mxu1 %vm314_vm7, %v297_v9 }
  0xe7   :  { %v291_v15 = vadd.f32 %v290_v11, %v282_v12  ;;  %v565_v16 = vpop.f32.mrf.mxu0  ;;  %596 = vmatprep.mubr.msk.bf16.mxu1 %vm620_vm2, %v619_v0  ;;  %593 = vmatpush3.bf16.msra.mxu1 %v617_v19 }
  0xe8   :  { %v575_v17 = vpop.f32.mrf.mxu1  ;;  %594 = vmatprep.subr.bf16.mxu1 %v619_v0 }
  0xe9   :  { %v292_v18 = vpack.c.bf16 %v291_v15, %v291_v15 }
  0xeb   :  { %589 = vmatmul.mubr.msk.bf16.vlgmr.msra.gmra.mxu0 %vm314_vm7, %v292_v18  ;;  %595 = vmatpush3.bf16.msra.mxu1 %v618_v20 }
 0x1a6   :  { %v352_v21 = vpop.f32.mrf.mxu1 }
 0x1a8   :  { %v582_v22 = vpop.f32.mrf.mxu1 }
 0x1aa   :  { %v355_v23 = vpop.f32.mrf.mxu1 }
 0x1ab   :  { %v407_v24 = vpop.f32.mrf.mxu0 }
 0x1ac   :  { %v408_v26 = vadd.f32 %v407_v24, %v352_v21  ;;  %v583_v27 = vpop.f32.mrf.mxu1 }
 0x1ad   :  { %v590_v28 = vpop.f32.mrf.mxu0 }
 0x1ae   :  { %v420_v29 = vadd.f32 %v523_v25, %v408_v26 }
 0x1af   :  { %v410_v30 = vpop.f32.mrf.mxu0 }
 0x1b0   :  { %489 = vrot.lane.b32.xlu1 %v420_v29, %s622_s0  ;;  %v421_v0 = vpack.c.bf16 %v420_v29, %v420_v29 }
 0x1b1   :  { %v591_v31 = vpop.f32.mrf.mxu0 }
 0x1b2   :  { %597 = vmatmul.mubr.msk.bf16.vlgmr.msra.gmra.mxu1 %vm314_vm7, %v421_v0 }
 0x222   :  { %v490_v38 = vpop.permute.xlu1 %489 }
 0x223   :  { %v496_v39 = vsel %vm314_vm7, %v271_v7, %v490_v38 }
 0x272   :  { %v482_v33 = vpop.f32.mrf.mxu1 }
 0x273   :  { %v483_v34 = vadd.f32 %v524_v32, %v482_v33 }
 0x274   :  { %v598_v35 = vpop.f32.mrf.mxu1 }
 0x275   :  { %493 = vrot.lane.b32.xlu1 %v483_v34, %s623_s29 }
 0x276   :  { %v485_v36 = vpop.f32.mrf.mxu1 }
 0x278   :  { %v599_v37 = vpop.f32.mrf.mxu1 }
 0x2e7   :  { %v494_v40 = vpop.permute.xlu1 %493 }
 0x2e8   :  { %v498_v41 = vsel %vm497_vm8, %v496_v39, %v494_v40 }
 0x2e9   :  { %v500_v42 = vsel %vm499_vm9, %v498_v41, 0.0 }
 0x2ea   :  { %501 = vst [vmem:[%s821_s14] sm:$0x3] %v500_v42 }

</bundles_post_ra>
